<compile_context>
chip_gen: v7x
topology: tpu7x:2x2x1
jax: 0.10.0
libtpu: 0.0.40
codegen_flags: <defaults>
</compile_context>

<pallas_src>
import functools

import jax
import jax.numpy as jnp
from jax.experimental import pallas as pl
from jax.experimental.pallas import tpu as pltpu

NEG_SLOPE = 0.2    # PyG GATConv default LeakyReLU negative slope
MASK_BIG = 1e30    # additive -inf surrogate (finite in f32 and bf16)


# ---------------------------------------------------------------------------
# Stage 1: hoisted per-layer feature transform (runs once, not per tile).
# ---------------------------------------------------------------------------
def _gat_transform_kernel(x_ref, w_ref, adstw_ref, asrcw_ref,
                          h_ref, adst_ref, asrcT_ref, *, apply_elu):
    xb = x_ref[...]                                           # [N, Fin] bf16
    if apply_elu:
        # ELU between conv1 and conv2.  Kept in f32 (v5e has no bf16 VPU/EUP)
        # and guarded with min(x, 0) so exp never overflows on the pos branch.
        xf = xb.astype(jnp.float32)
        xf = jnp.where(xf > 0, xf, jnp.exp(jnp.minimum(xf, 0.0)) - 1.0)
        xb = xf.astype(jnp.bfloat16)
    # Fused all-heads feature transform: bf16 MXU operands, f32 accumulate.
    h = jnp.dot(xb, w_ref[...], preferred_element_type=jnp.float32)   # [N, HC]
    h_ref[...] = h.astype(h_ref.dtype)                                # bf16 out
    # Tiny per-node attention-term matmuls (f32 for logit accuracy).
    adst_ref[...] = jnp.dot(h, adstw_ref[...],
                            preferred_element_type=jnp.float32)       # [N, H]
    asrcT_ref[...] = jax.lax.dot_general(
        asrcw_ref[...], h, (((1,), (1,)), ((), ())),
        preferred_element_type=jnp.float32)                           # [H, N]


# ---------------------------------------------------------------------------
# Stage 2: row-tiled masked-softmax aggregation over the dense adjacency.
# ---------------------------------------------------------------------------
def _gat_attention_kernel(h_ref, asrcT_ref, bias_ref, adst_ref, adj_ref,
                          o_ref, acc_ref, *, heads, out_ch, softmax_dtype):
    sd = softmax_dtype
    h = h_ref[...]                                            # [N, HC] bf16 (resident)
    a_src_t = asrcT_ref[...].astype(sd)                       # [H, N]
    a_dst = adst_ref[...].astype(sd)                          # [T, H]  (row tile)
    # Additive mask: 0 on edges, -MASK_BIG off-edge.  Self-loops guarantee at
    # least one live entry per row, so the softmax denominator stays > 0.
    neg = (adj_ref[...].astype(sd) - 1.0) * MASK_BIG          # [T, N]

    for hd in range(heads):                                   # static unroll (H small)
        c0 = hd * out_ch
        # Edge logit e[i, j] = LeakyReLU(a_dst[i] + a_src[j]) for edge j -> i.
        e = a_dst[:, hd:hd + 1] + a_src_t[hd:hd + 1, :]       # [T, N]
        e = jnp.maximum(e, NEG_SLOPE * e)                     # LeakyReLU (1 op)
        e = e + neg                                           # additive mask
        m = jnp.max(e, axis=-1, keepdims=True)
        p = jnp.exp(e - m)                                    # 0 off-edge
        denom = jnp.sum(p, axis=-1, keepdims=True, dtype=jnp.float32)   # [T, 1]
        inv = pl.reciprocal(denom, approx=True)               # EUP, not VPU divide
        # Aggregate with UNNORMALIZED weights (bf16 MXU operands, f32 accum);
        # fold the softmax denominator into the narrow [T, C] result instead
        # of normalizing the [T, N] weights.
        o_hd = jnp.dot(p.astype(jnp.bfloat16), h[:, c0:c0 + out_ch],
                       preferred_element_type=jnp.float32)    # [T, C]
        acc_ref[:, c0:c0 + out_ch] = o_hd * inv               # scratch, no concat

    # One full-tile store.  HC < 128 lanes means a masked store, but output
    # bytes are negligible vs. the adjacency stream, so HC is not zero-padded.
    o_ref[...] = (acc_ref[...] + bias_ref[...]).astype(o_ref.dtype)


# ---------------------------------------------------------------------------
# Wrapper helpers.
# ---------------------------------------------------------------------------
def _block_diag_att(att, heads, out_ch):
    """[H, C] per-head vectors -> [H*C, H] block-diagonal projection matrix."""
    eye = jnp.eye(heads, dtype=att.dtype)
    return (att[:, :, None] * eye[:, None, :]).reshape(heads * out_ch, heads)


def _block_diag_att_t(att, heads, out_ch):
    """[H, C] per-head vectors -> [H, H*C] transposed block-diagonal matrix."""
    eye = jnp.eye(heads, dtype=att.dtype)
    return (eye[:, :, None] * att[None, :, :]).reshape(heads, heads * out_ch)


def _pick_tile_n(n):
    """Largest row tile that keeps >= 2 grid steps (megacore) and int8 sublane
    tiling (multiples of 32); falls back to full N for tiny graphs."""
    for t in (512, 256, 128, 64, 32):
        if n % t == 0 and n // t >= 2:
            return t
    return n


def _softmax_dtype_for_device():
    """bf16 N^2 elementwise path on v6e/v7x; f32 on v5e/v5p and older."""
    try:
        kind = jax.devices()[0].device_kind.lower()
    except Exception:
        return jnp.float32
    if any(tag in kind for tag in ("v2", "v3", "v4", "v5")):
        return jnp.float32
    return jnp.bfloat16


def _vmem_cap_bytes():
    """Headroom-aware scoped-VMEM ceiling (v7x has only 64 MiB physical)."""
    try:
        kind = jax.devices()[0].device_kind.lower()
    except Exception:
        kind = ""
    if "7" in kind:
        return 56 * 1024 * 1024
    return 100 * 1024 * 1024


def _attention_vmem_bytes(n, tile_n, hc, heads, out_itemsize, single_buffer):
    resident_bufs = 1 if single_buffer else 2
    resident = resident_bufs * (n * hc * 2 + heads * n * 4 + hc * 4)
    tiled = 2 * (tile_n * n * 1 + tile_n * heads * 4 + tile_n * hc * out_itemsize)
    scratch = tile_n * hc * 4
    temps = 3 * tile_n * n * 4            # live [T, N] logit/softmax temporaries
    return resident + tiled + scratch + temps


# ---------------------------------------------------------------------------
# One GATConv layer (dense adjacency), heads fused.
# ---------------------------------------------------------------------------
def gat_conv(x, adj, W, att_src, att_dst, bias, *, heads, out_ch,
             apply_elu=False, tile_n=None, out_dtype=jnp.float32,
             softmax_dtype=None, single_buffer_resident=True):
    N, Fin = x.shape
    HC = heads * out_ch
    if tile_n is None:
        tile_n = _pick_tile_n(N)
    assert N % tile_n == 0, "tile_n must divide N"
    assert tile_n == N or tile_n % 32 == 0, "tile_n must be N or a multiple of 32"
    if softmax_dtype is None:
        softmax_dtype = _softmax_dtype_for_device()

    xb = x if x.dtype == jnp.bfloat16 else x.astype(jnp.bfloat16)
    Wb = W.astype(jnp.bfloat16)
    adstw = _block_diag_att(att_dst.reshape(heads, out_ch), heads, out_ch)      # [HC, H]
    asrcw = _block_diag_att_t(att_src.reshape(heads, out_ch), heads, out_ch)    # [H, HC]
    bias2 = bias.reshape(1, HC).astype(jnp.float32)

    # ---- Stage 1: hoisted transform (single step, whole arrays in VMEM). ----
    h, a_dst, a_srcT = pl.pallas_call(
        functools.partial(_gat_transform_kernel, apply_elu=apply_elu),
        out_shape=(jax.ShapeDtypeStruct((N, HC), jnp.bfloat16),
                   jax.ShapeDtypeStruct((N, heads), jnp.float32),
                   jax.ShapeDtypeStruct((heads, N), jnp.float32)),
    )(xb, Wb, adstw, asrcw)

    # ---- Stage 2: row-tiled attention/aggregation. ----
    def res_spec(shape):
        idx = lambda i: (0, 0)
        if single_buffer_resident:
            # Constant-index residents: single-buffer to halve their VMEM cost.
            return pl.BlockSpec(shape, idx, pipeline_mode=pl.Buffered(1))
        return pl.BlockSpec(shape, idx)

    est = _attention_vmem_bytes(N, tile_n, HC, heads,
                                jnp.dtype(out_dtype).itemsize,
                                single_buffer_resident)
    vmem_limit = int(min(max(2 * est, 32 * 1024 * 1024), _vmem_cap_bytes()))

    kernel = functools.partial(_gat_attention_kernel, heads=heads, out_ch=out_ch,
                               softmax_dtype=softmax_dtype)
    out = pl.pallas_call(
        kernel,
        out_shape=jax.ShapeDtypeStruct((N, HC), out_dtype),
        grid_spec=pltpu.PrefetchScalarGridSpec(
            num_scalar_prefetch=0,
            grid=(N // tile_n,),
            in_specs=[
                res_spec((N, HC)),                                 # h (resident, bf16)
                res_spec((heads, N)),                              # a_src^T (resident)
                res_spec((1, HC)),                                 # bias (resident)
                pl.BlockSpec((tile_n, heads), lambda i: (i, 0)),   # a_dst row tile
                pl.BlockSpec((tile_n, N), lambda i: (i, 0)),       # int8 adjacency strip
            ],
            out_specs=pl.BlockSpec((tile_n, HC), lambda i: (i, 0)),
            scratch_shapes=[pltpu.VMEM((tile_n, HC), jnp.float32)],
        ),
        compiler_params=pltpu.CompilerParams(
            dimension_semantics=("parallel",),
            vmem_limit_bytes=vmem_limit),
    )(h, a_srcT, bias2, a_dst, adj)
    return out


# ---------------------------------------------------------------------------
# Model: dropout (eval: identity) -> conv1 -> ELU -> dropout -> conv2.
# ---------------------------------------------------------------------------
def gat_forward(params, x, adj, *, hidden_channels, num_classes, heads,
                tile_n=None, softmax_dtype=None, single_buffer_resident=True):
    # F.dropout(p=0.6) is identity in eval mode.
    h = gat_conv(x, adj, params["W1"], params["asrc1"], params["adst1"],
                 params["b1"], heads=heads, out_ch=hidden_channels,
                 apply_elu=False, tile_n=tile_n,
                 out_dtype=jnp.bfloat16,                 # bf16 inter-layer activation
                 softmax_dtype=softmax_dtype,
                 single_buffer_resident=single_buffer_resident)
    # F.elu + second dropout (identity in eval); ELU fused into conv2 stage 1.
    out = gat_conv(h, adj, params["W2"], params["asrc2"], params["adst2"],
                   params["b2"], heads=1, out_ch=num_classes,
                   apply_elu=True, tile_n=tile_n, out_dtype=jnp.float32,
                   softmax_dtype=softmax_dtype,
                   single_buffer_resident=single_buffer_resident)
    return out


def edge_index_to_adj(edge_index, num_nodes):
    # int8 adjacency: quarters the dominant HBM->VMEM stream vs float32.
    # Note: duplicate edges collapse to one edge (differs from PyG on multigraphs).
    src, dst = edge_index[0], edge_index[1]
    adj = jnp.zeros((num_nodes, num_nodes), jnp.int8)
    adj = adj.at[dst, src].set(1)
    diag = jnp.arange(num_nodes)
    adj = adj.at[diag, diag].set(1)    # add_self_loops=True (PyG default)
    return adj


def init_gat_params(key, num_features, hidden_channels, num_classes, heads):
    """Deterministic glorot-uniform init matching GATConv parameter shapes."""
    ks = jax.random.split(key, 6)

    def glorot(k, shape):
        fan_in, fan_out = shape[0], shape[-1]
        limit = (6.0 / (fan_in + fan_out)) ** 0.5
        return jax.random.uniform(k, shape, jnp.float32, -limit, limit)

    return dict(
        W1=glorot(ks[0], (num_features, heads * hidden_channels)),
        asrc1=glorot(ks[1], (heads, hidden_channels)),
        adst1=glorot(ks[2], (heads, hidden_channels)),
        b1=jnp.zeros((heads * hidden_channels,), jnp.float32),
        W2=glorot(ks[3], (heads * hidden_channels, num_classes)),
        asrc2=glorot(ks[4], (1, num_classes)),
        adst2=glorot(ks[5], (1, num_classes)),
        b2=jnp.zeros((num_classes,), jnp.float32),
    )


if __name__ == "__main__":
    key = jax.random.PRNGKey(0)
    N, F_IN, HID, CLS, HEADS, E = 64, 16, 8, 4, 4, 256

    kx, ke, kp = jax.random.split(key, 3)
    x = jax.random.normal(kx, (N, F_IN), dtype=jnp.float32)
    edge_index = jax.random.randint(ke, (2, E), 0, N, dtype=jnp.int32)
    adj = edge_index_to_adj(edge_index, N)
    params = init_gat_params(kp, F_IN, HID, CLS, HEADS)

    def run(single_buffer_resident, softmax_dtype):
        out = gat_forward(params, x, adj, hidden_channels=HID,
                          num_classes=CLS, heads=HEADS,
                          single_buffer_resident=single_buffer_resident,
                          softmax_dtype=softmax_dtype)
        return jax.block_until_ready(out)

    try:
        # Tuned path: single-buffered residents + chip-dependent softmax dtype.
        out = run(True, None)
    except Exception:
        # Conservative fallback (double-buffered residents, f32 softmax) in case
        # pl.Buffered(1) or the bf16 elementwise path is unsupported on this chip.
        out = run(False, jnp.float32)

    assert out.shape == (N, CLS), out.shape
    assert bool(jnp.all(jnp.isfinite(out)))
    print("KERNEL_OK")
</pallas_src>

<mosaic_0001>
module attributes {stable_mosaic.version = 11 : i64} {
  func.func @_gat_transform_kernel(%arg0: memref<64x16xbf16, #tpu.memory_space<vmem>>, %arg1: memref<16x32xbf16, #tpu.memory_space<vmem>>, %arg2: memref<32x4xf32, #tpu.memory_space<vmem>>, %arg3: memref<4x32xf32, #tpu.memory_space<vmem>>, %arg4: memref<64x32xbf16, #tpu.memory_space<vmem>>, %arg5: memref<64x4xf32, #tpu.memory_space<vmem>>, %arg6: memref<4x64xf32, #tpu.memory_space<vmem>>) attributes {dimension_semantics = [], scalar_prefetch = 0 : i64, scratch_operands = 0 : i64, tpu.core_type = #tpu.core_type<tc>} {
    %c0 = arith.constant 0 : index
    %c0_0 = arith.constant 0 : index
    %0 = vector.load %arg0[%c0, %c0_0] : memref<64x16xbf16, #tpu.memory_space<vmem>>, vector<64x16xbf16>
    %c0_1 = arith.constant 0 : index
    %c0_2 = arith.constant 0 : index
    %1 = vector.load %arg1[%c0_1, %c0_2] : memref<16x32xbf16, #tpu.memory_space<vmem>>, vector<16x32xbf16>
    %cst = arith.constant dense<0.000000e+00> : vector<64x32xf32>
    %2 = tpu.matmul %0, %1, %cst {dimension_numbers = #tpu.dot_dimension_numbers<[1], [0], [0], [1], [0, 0, 1, 1], [], []>} : vector<64x16xbf16>, vector<16x32xbf16>, vector<64x32xf32> -> vector<64x32xf32>
    %3 = arith.truncf %2 : vector<64x32xf32> to vector<64x32xbf16>
    %c0_3 = arith.constant 0 : index
    %c0_4 = arith.constant 0 : index
    %4 = vector.load %arg4[%c0_3, %c0_4] : memref<64x32xbf16, #tpu.memory_space<vmem>>, vector<64x32xbf16>
    tpu.vector_store %arg4[%c0_3, %c0_4], %3 {strides = array<i32>} : memref<64x32xbf16, #tpu.memory_space<vmem>>, vector<64x32xbf16>,
    %c0_5 = arith.constant 0 : index
    %c0_6 = arith.constant 0 : index
    %5 = vector.load %arg2[%c0_5, %c0_6] : memref<32x4xf32, #tpu.memory_space<vmem>>, vector<32x4xf32>
    %cst_7 = arith.constant dense<0.000000e+00> : vector<64x4xf32>
    %6 = tpu.matmul %2, %5, %cst_7 {dimension_numbers = #tpu.dot_dimension_numbers<[1], [0], [0], [1], [0, 0, 1, 1], [], []>} : vector<64x32xf32>, vector<32x4xf32>, vector<64x4xf32> -> vector<64x4xf32>
    %c0_8 = arith.constant 0 : index
    %c0_9 = arith.constant 0 : index
    %7 = vector.load %arg5[%c0_8, %c0_9] : memref<64x4xf32, #tpu.memory_space<vmem>>, vector<64x4xf32>
    tpu.vector_store %arg5[%c0_8, %c0_9], %6 {strides = array<i32>} : memref<64x4xf32, #tpu.memory_space<vmem>>, vector<64x4xf32>,
    %c0_10 = arith.constant 0 : index
    %c0_11 = arith.constant 0 : index
    %8 = vector.load %arg3[%c0_10, %c0_11] : memref<4x32xf32, #tpu.memory_space<vmem>>, vector<4x32xf32>
    %cst_12 = arith.constant dense<0.000000e+00> : vector<4x64xf32>
    %9 = tpu.matmul %8, %2, %cst_12 {dimension_numbers = #tpu.dot_dimension_numbers<[1], [1], [0], [0], [0, 0, 1, 0], [], []>} : vector<4x32xf32>, vector<64x32xf32>, vector<4x64xf32> -> vector<4x64xf32>
    %c0_13 = arith.constant 0 : index
    %c0_14 = arith.constant 0 : index
    %10 = vector.load %arg6[%c0_13, %c0_14] : memref<4x64xf32, #tpu.memory_space<vmem>>, vector<4x64xf32>
    tpu.vector_store %arg6[%c0_13, %c0_14], %9 {strides = array<i32>} : memref<4x64xf32, #tpu.memory_space<vmem>>, vector<4x64xf32>,
    return
  }
}

module attributes {stable_mosaic.version = 11 : i64} {
  func.func @_gat_transform_kernel(%arg0: memref<64x16xbf16, #tpu.memory_space<vmem>>, %arg1: memref<16x32xbf16, #tpu.memory_space<vmem>>, %arg2: memref<32x4xf32, #tpu.memory_space<vmem>>, %arg3: memref<4x32xf32, #tpu.memory_space<vmem>>, %arg4: memref<64x32xbf16, #tpu.memory_space<vmem>>, %arg5: memref<64x4xf32, #tpu.memory_space<vmem>>, %arg6: memref<4x64xf32, #tpu.memory_space<vmem>>) attributes {dimension_semantics = [], scalar_prefetch = 0 : i64, scratch_operands = 0 : i64, tpu.core_type = #tpu.core_type<tc>} {
    %c0 = arith.constant 0 : index
    %c0_0 = arith.constant 0 : index
    %0 = vector.load %arg0[%c0, %c0_0] : memref<64x16xbf16, #tpu.memory_space<vmem>>, vector<64x16xbf16>
    %c0_1 = arith.constant 0 : index
    %c0_2 = arith.constant 0 : index
    %1 = vector.load %arg1[%c0_1, %c0_2] : memref<16x32xbf16, #tpu.memory_space<vmem>>, vector<16x32xbf16>
    %cst = arith.constant dense<0.000000e+00> : vector<64x32xf32>
    %2 = tpu.matmul %0, %1, %cst {dimension_numbers = #tpu.dot_dimension_numbers<[1], [0], [0], [1], [0, 0, 1, 1], [], []>} : vector<64x16xbf16>, vector<16x32xbf16>, vector<64x32xf32> -> vector<64x32xf32>
    %3 = arith.truncf %2 : vector<64x32xf32> to vector<64x32xbf16>
    %c0_3 = arith.constant 0 : index
    %c0_4 = arith.constant 0 : index
    %4 = vector.load %arg4[%c0_3, %c0_4] : memref<64x32xbf16, #tpu.memory_space<vmem>>, vector<64x32xbf16>
    tpu.vector_store %arg4[%c0_3, %c0_4], %3 {strides = array<i32>} : memref<64x32xbf16, #tpu.memory_space<vmem>>, vector<64x32xbf16>,
    %c0_5 = arith.constant 0 : index
    %c0_6 = arith.constant 0 : index
    %5 = vector.load %arg2[%c0_5, %c0_6] : memref<32x4xf32, #tpu.memory_space<vmem>>, vector<32x4xf32>
    %cst_7 = arith.constant dense<0.000000e+00> : vector<64x4xf32>
    %6 = tpu.matmul %2, %5, %cst_7 {dimension_numbers = #tpu.dot_dimension_numbers<[1], [0], [0], [1], [0, 0, 1, 1], [], []>} : vector<64x32xf32>, vector<32x4xf32>, vector<64x4xf32> -> vector<64x4xf32>
    %c0_8 = arith.constant 0 : index
    %c0_9 = arith.constant 0 : index
    %7 = vector.load %arg5[%c0_8, %c0_9] : memref<64x4xf32, #tpu.memory_space<vmem>>, vector<64x4xf32>
    tpu.vector_store %arg5[%c0_8, %c0_9], %6 {strides = array<i32>} : memref<64x4xf32, #tpu.memory_space<vmem>>, vector<64x4xf32>,
    %c0_10 = arith.constant 0 : index
    %c0_11 = arith.constant 0 : index
    %8 = vector.load %arg3[%c0_10, %c0_11] : memref<4x32xf32, #tpu.memory_space<vmem>>, vector<4x32xf32>
    %cst_12 = arith.constant dense<0.000000e+00> : vector<4x64xf32>
    %9 = tpu.matmul %8, %2, %cst_12 {dimension_numbers = #tpu.dot_dimension_numbers<[1], [1], [0], [0], [0, 0, 1, 0], [], []>} : vector<4x32xf32>, vector<64x32xf32>, vector<4x64xf32> -> vector<4x64xf32>
    %c0_13 = arith.constant 0 : index
    %c0_14 = arith.constant 0 : index
    %10 = vector.load %arg6[%c0_13, %c0_14] : memref<4x64xf32, #tpu.memory_space<vmem>>, vector<4x64xf32>
    tpu.vector_store %arg6[%c0_13, %c0_14], %9 {strides = array<i32>} : memref<4x64xf32, #tpu.memory_space<vmem>>, vector<4x64xf32>,
    return
  }
}

</mosaic_0001>

<bundles_post_ra>
// kernel: tpu_custom_call.1
= control target key start
LH: loop header
LB: loop body
LE: loop exit
PB: predicated region body
PF: predicated region fallthrough
CT: control target
= control target key end

     0   :  { %vm58_vm0 = vcmask 130048   ;;  %s764_s0 = inlined_call_operand.vmem [shape: bf16[64,16], index: 0, kind: input, shape index: {}]   ;;  %s765_s1 = inlined_call_operand.vmem [shape: bf16[16,32], index: 1, kind: input, shape index: {}]   ;;  %s766_s2 = inlined_call_operand.vmem [shape: f32[32,4], index: 2, kind: input, shape index: {}]   ;;  %s767_s3 = inlined_call_operand.vmem [shape: f32[4,32], index: 3, kind: input, shape index: {}]   ;;  %s768_s4 = inlined_call_operand.vmem [shape: bf16[64,32], index: 4, kind: output, shape index: {0}]   ;;  %s769_s5 = inlined_call_operand.vmem [shape: f32[64,4], index: 5, kind: output, shape index: {1}]   ;;  %s770_s6 = inlined_call_operand.hbm [shape: f32[4,64], index: 6, kind: output, shape index: {2}]  }
   0x1   :  { %v563_v0 = vld [vmem:[%s765_s1] sm:$0xff]   ;;  %v565_v2 = vld [vmem:[%s764_s0 + $0x8] sm:$0xff]   ;;  %v566_v3 = vld [vmem:[%s764_s0 + $0x10] sm:$0xff]  }
   0x2   :  { %v564_v1 = vld [vmem:[%s764_s0] sm:$0xff]   ;;  %486 = vmatprep.subr.bf16.mxu1 %v563_v0  ;;  %v178_v5 = vld [vmem:[%s766_s2 + $0x8] sm:$0xff] }
   0x3   :  { %487 = vmatpush3.bf16.msra.mxu1 %v563_v0  ;;  %488 = vmatprep.mubr.msk.bf16.mxu1 %vm58_vm0, %v564_v1  ;;  %v177_v4 = vld [vmem:[%s766_s2] sm:$0xff] }
   0x4   :  { %12 = vsyncpa [#allocation3], 0  ;;  %v535_v6 = vpack.c.bf16 %v178_v5, %v177_v4  ;;  %v567_v7 = vld [vmem:[%s764_s0 + $0x18] sm:$0xff]   ;;  %v179_v8 = vld [vmem:[%s766_s2 + $0x10] sm:$0xff]  ;;  %v592_v11 = vmov 0.0|0.0   ;;  %vm593_vm1 = vmmov 0  }
   0x5   :  { %v180_v9 = vld [vmem:[%s766_s2 + $0x18] sm:$0xff]  ;;  %543 = vmatprep.subr.bf16.mxu0 %v592_v11  ;;  %v594_v12 = vmov 0.0   ;;  %vm181_vm2 = vcmask 261120   ;;  %vm168_vm3 = vcmask 257024   ;;  %v320_v34 = vld [vmem:[%s767_s3] sm:$0xf] }
   0x6   :  { %489 = vmatmul.mubr.msk.bf16.vlgmr.msra.gmra.mrb[0].mxu1 %vm58_vm0, %v565_v2  ;;  %536 = vmatprep.subr.bf16.mxu1 %v535_v6  ;;  %v539_v10 = vpack.c.bf16 %v180_v9, %v179_v8  ;;  %vm669_vm4 = vmpackc.low %vm181_vm2, %vm181_vm2  ;;  %vm311_vm5 = vcmask 31744   ;;  %s595_s17 = smov [#allocation2]   ;;  %vm394_vm6 = vcmask 519168  }
   0x7   :  { %492 = vmatprep.mubr.msk.bf16.mxu1 %vm58_vm0, %v566_v3  ;;  %538 = vmatpush3.bf16.msra.mxu1 %v535_v6  ;;  %s406_s18 = sshll.u32 %s595_s17, 4  ;;  %s407_s18 = int_to_ptr.vmem [resolvable:$true] %s406_s18 }
   0x8   :  { %540 = vmatprep.subr.bf16.mxu1 %v539_v10  ;;  %532 = vmatprep.mubr.msk.f32.mxu0 %vm593_vm1, %v594_v12  ;;  %s568_s19 = scalar_lea.vmem %s407_s18, 64  ;;  %p573_p1 = scmp.lt.s32.totalorder %s407_s18, %s407_s18 }
   0x9   :  { %p569_p0 = scmp.ne.s32.totalorder %s407_s18, %s568_s19  ;;  %p574_p2 = scmp.lt.s32.totalorder %s568_s19, %s568_s19 }
   0xb   :  { %542 = vmatpush3.bf16.msra.mxu1 %v539_v10  ;;  %p575_p3 = por %p574_p2, %p573_p1 }
   0xd   :  { %p576_p4 = pnand %p575_p3, %p569_p0 }
   0xe   :  { %493 = vmatmul.mubr.msk.bf16.gmra.mrb[4].mxu1 %vm58_vm0, %v567_v7 }
  0xd9   :  { %v490_v13 = vpop.f32.mrb[0].mxu1 }
  0xda   :  { %v454_v14 = vpack.c.bf16 %v490_v13, %v490_v13  ;;  %v105_v15 = vpop.f32.mrb[1].mxu1 }
  0xdb   :  { %v452_v16 = vpack.c.bf16 %v105_v15, %v105_v15  ;;  %v491_v17 = vpop.f32.mrb[2].mxu1  ;;  %504 = vmatprep.mubr.msk.f32.mxu1 %vm181_vm2, %v105_v15 }
  0xdc   :  { %171 = vst.msk [vmem:[%s768_s4 + $0x8] sm:$0xf] %vm168_vm3, %v454_v14  ;;  %v455_v18 = vpack.c.bf16 %v491_v17, %v491_v17  ;;  %v548_v19 = vpack.c.bf16 %v491_v17, %v490_v13  ;;  %v108_v20 = vpop.f32.mrb[3].mxu1 }
  0xdd   :  { %169 = vst.msk [vmem:[%s768_s4] sm:$0xf] %vm168_vm3, %v452_v16  ;;  %v453_v22 = vpack.c.bf16 %v108_v20, %v108_v20  ;;  %v544_v23 = vpack.c.bf16 %v108_v20, %v105_v15  ;;  %505 = vmatmul.mubr.msk.f32.vlgmr.msra.gmra.mrb[8].mxu1 %vm181_vm2, %v108_v20 }
  0xde   :  { %172 = vst.msk [vmem:[%s768_s4 + $0xc] sm:$0xf] %vm168_vm3, %v455_v18  ;;  %507 = vmatprep.mubr.msk.f32.mxu1 %vm181_vm2, %v490_v13 }
  0xdf   :  { %170 = vst.msk [vmem:[%s768_s4 + $0x4] sm:$0xf] %vm168_vm3, %v453_v22  ;;  %546 = vmatpush3.bf16.xpose.msk.msra.mxu0 %vm669_vm4, %v544_v23 }
  0xe0   :  { %547 = vmatprep.subr.bf16.mxu0 %v592_v11 }
  0xe1   :  { %v494_v24 = vpop.f32.mrb[4].mxu1  ;;  %508 = vmatmul.mubr.msk.f32.gmra.mrb[10].mxu1 %vm181_vm2, %v491_v17 }
  0xe2   :  { %v458_v25 = vpack.c.bf16 %v494_v24, %v494_v24  ;;  %v121_v26 = vpop.f32.mrb[5].mxu1 }
  0xe3   :  { %v456_v27 = vpack.c.bf16 %v121_v26, %v121_v26  ;;  %v495_v28 = vpop.f32.mrb[6].mxu1  ;;  %510 = vmatprep.mubr.msk.f32.mxu1 %vm181_vm2, %v121_v26 }
  0xe4   :  { %175 = vst.msk [vmem:[%s768_s4 + $0x18] sm:$0xf] %vm168_vm3, %v458_v25  ;;  %v459_v29 = vpack.c.bf16 %v495_v28, %v495_v28  ;;  %v556_v30 = vpack.c.bf16 %v495_v28, %v494_v24  ;;  %v124_v31 = vpop.f32.mrb[7].mxu1 }
  0xe5   :  { %173 = vst.msk [vmem:[%s768_s4 + $0x10] sm:$0xf] %vm168_vm3, %v456_v27  ;;  %v457_v32 = vpack.c.bf16 %v124_v31, %v124_v31  ;;  %v552_v33 = vpack.c.bf16 %v124_v31, %v121_v26  ;;  %511 = vmatmul.mubr.msk.f32.gmra.mrb[12].mxu1 %vm181_vm2, %v124_v31 }
  0xe6   :  { %176 = vst.msk [vmem:[%s768_s4 + $0x1c] sm:$0xf] %vm168_vm3, %v459_v29  ;;  %513 = vmatprep.mubr.msk.f32.mxu1 %vm181_vm2, %v494_v24 }
  0xe7   :  { %174 = vst.msk [vmem:[%s768_s4 + $0x14] sm:$0xf] %vm168_vm3, %v457_v32  ;;  %550 = vmatpush3.bf16.xpose.msk.msra.mxu0 %vm669_vm4, %v548_v19 }
  0xe8   :  { %551 = vmatprep.subr.bf16.mxu0 %v592_v11 }
  0xe9   :  { %514 = vmatmul.mubr.msk.f32.gmra.mrb[14].mxu1 %vm181_vm2, %v495_v28 }
  0xef   :  { %554 = vmatpush3.bf16.xpose.msk.msra.mxu0 %vm669_vm4, %v552_v33 }
  0xf0   :  { %555 = vmatprep.subr.bf16.mxu0 %v592_v11 }
  0xf7   :  { %558 = vmatpush3.bf16.xpose.msk.msra.mxu0 %vm669_vm4, %v556_v30 }
  0xfe   :  { %533 = vmatmul.mubr.msk.f32.vlgmr.msra.gmra.mrb[0].mxu0 %vm181_vm2, %v320_v34 }
 0x1b0   :  { %v506_v35 = vpop.f32.mrb[8].mxu1 }
 0x1b1   :  { %313 = vst.msk [vmem:[%s769_s5 + $0x8] sm:$0xff] %vm311_vm5, %v506_v35  ;;  %v272_v36 = vpop.f32.mrb[9].mxu1 }
 0x1b2   :  { %312 = vst.msk [vmem:[%s769_s5] sm:$0xff] %vm311_vm5, %v272_v36 }
 0x1b4   :  { %v509_v37 = vpop.f32.mrb[10].mxu1 }
 0x1b5   :  { %315 = vst.msk [vmem:[%s769_s5 + $0x18] sm:$0xff] %vm311_vm5, %v509_v37  ;;  %v282_v38 = vpop.f32.mrb[11].mxu1 }
 0x1b6   :  { %314 = vst.msk [vmem:[%s769_s5 + $0x10] sm:$0xff] %vm311_vm5, %v282_v38 }
 0x1b8   :  { %v512_v39 = vpop.f32.mrb[12].mxu1 }
 0x1b9   :  { %317 = vst.msk [vmem:[%s769_s5 + $0x28] sm:$0xff] %vm311_vm5, %v512_v39  ;;  %v292_v40 = vpop.f32.mrb[13].mxu1 }
 0x1ba   :  { %316 = vst.msk [vmem:[%s769_s5 + $0x20] sm:$0xff] %vm311_vm5, %v292_v40 }
 0x1bc   :  { %v515_v41 = vpop.f32.mrb[14].mxu1 }
 0x1bd   :  { %319 = vst.msk [vmem:[%s769_s5 + $0x38] sm:$0xff] %vm311_vm5, %v515_v41  ;;  %v302_v42 = vpop.f32.mrb[15].mxu1 }
 0x1be   :  { %318 = vst.msk [vmem:[%s769_s5 + $0x30] sm:$0xff] %vm311_vm5, %v302_v42 }
 0x1d1   :  { %v390_v43 = vpop.f32.mrb[0].mxu0 }
 0x1d2   :  { %395 = vst.msk [vmem:[#allocation2] sm:$0xf] %vm394_vm6, %v390_v43  ;;  %v534_v44 = vpop.f32.mrb[1].mxu0 }
 0x1d3   :  { %579 = shalt.err (!%p576_p4)
}
 0x1d4   :  { %s580_s22 = scalar_lea.hbm %s770_s6, 64 }
 0x1d5   :  { %p581_p5 = scmp.ne.s32.totalorder %s770_s6, %s580_s22  ;;  %p584_p6 = scmp.lt.u32.totalorder %s580_s22, %s770_s6 }
 0x1d7   :  { %p586_p7 = pnand %p584_p6, %p581_p5 }
 0x1d9   :  { %589 = shalt.err (!%p586_p7)
}
 0x1da   :  { %409 = dma.vmem_to_hbm [thread:$0]  %s407_s18, 64, %s770_s6, [#allocation3]  }
 0x1db   :  { %590 = dma.done.wait [#allocation3], 64  }
 0x1dc   :  { %591 = vsyncadd [#allocation3], 4294967232 }
 0x1dd   :  { %417 = vsyncpa [#allocation3], 1 }

// kernel: tpu_custom_call.1
= control target key start
LH: loop header
LB: loop body
LE: loop exit
PB: predicated region body
PF: predicated region fallthrough
CT: control target
= control target key end

     0   :  { %vm58_vm0 = vcmask 130048   ;;  %s764_s0 = inlined_call_operand.vmem [shape: bf16[64,16], index: 0, kind: input, shape index: {}]   ;;  %s765_s1 = inlined_call_operand.vmem [shape: bf16[16,32], index: 1, kind: input, shape index: {}]   ;;  %s766_s2 = inlined_call_operand.vmem [shape: f32[32,4], index: 2, kind: input, shape index: {}]   ;;  %s767_s3 = inlined_call_operand.vmem [shape: f32[4,32], index: 3, kind: input, shape index: {}]   ;;  %s768_s4 = inlined_call_operand.vmem [shape: bf16[64,32], index: 4, kind: output, shape index: {0}]   ;;  %s769_s5 = inlined_call_operand.vmem [shape: f32[64,4], index: 5, kind: output, shape index: {1}]   ;;  %s770_s6 = inlined_call_operand.hbm [shape: f32[4,64], index: 6, kind: output, shape index: {2}]  }
   0x1   :  { %v563_v0 = vld [vmem:[%s765_s1] sm:$0xff]   ;;  %v565_v2 = vld [vmem:[%s764_s0 + $0x8] sm:$0xff]   ;;  %v566_v3 = vld [vmem:[%s764_s0 + $0x10] sm:$0xff]  }
   0x2   :  { %v564_v1 = vld [vmem:[%s764_s0] sm:$0xff]   ;;  %486 = vmatprep.subr.bf16.mxu1 %v563_v0  ;;  %v178_v5 = vld [vmem:[%s766_s2 + $0x8] sm:$0xff] }
   0x3   :  { %487 = vmatpush3.bf16.msra.mxu1 %v563_v0  ;;  %488 = vmatprep.mubr.msk.bf16.mxu1 %vm58_vm0, %v564_v1  ;;  %v177_v4 = vld [vmem:[%s766_s2] sm:$0xff] }
   0x4   :  { %12 = vsyncpa [#allocation3], 0  ;;  %v535_v6 = vpack.c.bf16 %v178_v5, %v177_v4  ;;  %v567_v7 = vld [vmem:[%s764_s0 + $0x18] sm:$0xff]   ;;  %v179_v8 = vld [vmem:[%s766_s2 + $0x10] sm:$0xff]  ;;  %v592_v11 = vmov 0.0|0.0   ;;  %vm593_vm1 = vmmov 0  }
   0x5   :  { %v180_v9 = vld [vmem:[%s766_s2 + $0x18] sm:$0xff]  ;;  %543 = vmatprep.subr.bf16.mxu0 %v592_v11  ;;  %v594_v12 = vmov 0.0   ;;  %vm181_vm2 = vcmask 261120   ;;  %vm168_vm3 = vcmask 257024   ;;  %v320_v34 = vld [vmem:[%s767_s3] sm:$0xf] }
   0x6   :  { %489 = vmatmul.mubr.msk.bf16.vlgmr.msra.gmra.mrb[0].mxu1 %vm58_vm0, %v565_v2  ;;  %536 = vmatprep.subr.bf16.mxu1 %v535_v6  ;;  %v539_v10 = vpack.c.bf16 %v180_v9, %v179_v8  ;;  %vm669_vm4 = vmpackc.low %vm181_vm2, %vm181_vm2  ;;  %vm311_vm5 = vcmask 31744   ;;  %s595_s17 = smov [#allocation2]   ;;  %vm394_vm6 = vcmask 519168  }
   0x7   :  { %492 = vmatprep.mubr.msk.bf16.mxu1 %vm58_vm0, %v566_v3  ;;  %538 = vmatpush3.bf16.msra.mxu1 %v535_v6  ;;  %s406_s18 = sshll.u32 %s595_s17, 4  ;;  %s407_s18 = int_to_ptr.vmem [resolvable:$true] %s406_s18 }
   0x8   :  { %540 = vmatprep.subr.bf16.mxu1 %v539_v10  ;;  %532 = vmatprep.mubr.msk.f32.mxu0 %vm593_vm1, %v594_v12  ;;  %s568_s19 = scalar_lea.vmem %s407_s18, 64  ;;  %p573_p1 = scmp.lt.s32.totalorder %s407_s18, %s407_s18 }
   0x9   :  { %p569_p0 = scmp.ne.s32.totalorder %s407_s18, %s568_s19  ;;  %p574_p2 = scmp.lt.s32.totalorder %s568_s19, %s568_s19 }
   0xb   :  { %542 = vmatpush3.bf16.msra.mxu1 %v539_v10  ;;  %p575_p3 = por %p574_p2, %p573_p1 }
   0xd   :  { %p576_p4 = pnand %p575_p3, %p569_p0 }
   0xe   :  { %493 = vmatmul.mubr.msk.bf16.gmra.mrb[4].mxu1 %vm58_vm0, %v567_v7 }
  0xd9   :  { %v490_v13 = vpop.f32.mrb[0].mxu1 }
  0xda   :  { %v454_v14 = vpack.c.bf16 %v490_v13, %v490_v13  ;;  %v105_v15 = vpop.f32.mrb[1].mxu1 }
  0xdb   :  { %v452_v16 = vpack.c.bf16 %v105_v15, %v105_v15  ;;  %v491_v17 = vpop.f32.mrb[2].mxu1  ;;  %504 = vmatprep.mubr.msk.f32.mxu1 %vm181_vm2, %v105_v15 }
  0xdc   :  { %171 = vst.msk [vmem:[%s768_s4 + $0x8] sm:$0xf] %vm168_vm3, %v454_v14  ;;  %v455_v18 = vpack.c.bf16 %v491_v17, %v491_v17  ;;  %v548_v19 = vpack.c.bf16 %v491_v17, %v490_v13  ;;  %v108_v20 = vpop.f32.mrb[3].mxu1 }
  0xdd   :  { %169 = vst.msk [vmem:[%s768_s4] sm:$0xf] %vm168_vm3, %v452_v16  ;;  %v453_v22 = vpack.c.bf16 %v108_v20, %v108_v20  ;;  %v544_v23 = vpack.c.bf16 %v108_v20, %v105_v15  ;;  %505 = vmatmul.mubr.msk.f32.vlgmr.msra.gmra.mrb[8].mxu1 %vm181_vm2, %v108_v20 }
  0xde   :  { %172 = vst.msk [vmem:[%s768_s4 + $0xc] sm:$0xf] %vm168_vm3, %v455_v18  ;;  %507 = vmatprep.mubr.msk.f32.mxu1 %vm181_vm2, %v490_v13 }
  0xdf   :  { %170 = vst.msk [vmem:[%s768_s4 + $0x4] sm:$0xf] %vm168_vm3, %v453_v22  ;;  %546 = vmatpush3.bf16.xpose.msk.msra.mxu0 %vm669_vm4, %v544_v23 }
  0xe0   :  { %547 = vmatprep.subr.bf16.mxu0 %v592_v11 }
  0xe1   :  { %v494_v24 = vpop.f32.mrb[4].mxu1  ;;  %508 = vmatmul.mubr.msk.f32.gmra.mrb[10].mxu1 %vm181_vm2, %v491_v17 }
  0xe2   :  { %v458_v25 = vpack.c.bf16 %v494_v24, %v494_v24  ;;  %v121_v26 = vpop.f32.mrb[5].mxu1 }
  0xe3   :  { %v456_v27 = vpack.c.bf16 %v121_v26, %v121_v26  ;;  %v495_v28 = vpop.f32.mrb[6].mxu1  ;;  %510 = vmatprep.mubr.msk.f32.mxu1 %vm181_vm2, %v121_v26 }
  0xe4   :  { %175 = vst.msk [vmem:[%s768_s4 + $0x18] sm:$0xf] %vm168_vm3, %v458_v25  ;;  %v459_v29 = vpack.c.bf16 %v495_v28, %v495_v28  ;;  %v556_v30 = vpack.c.bf16 %v495_v28, %v494_v24  ;;  %v124_v31 = vpop.f32.mrb[7].mxu1 }
  0xe5   :  { %173 = vst.msk [vmem:[%s768_s4 + $0x10] sm:$0xf] %vm168_vm3, %v456_v27  ;;  %v457_v32 = vpack.c.bf16 %v124_v31, %v124_v31  ;;  %v552_v33 = vpack.c.bf16 %v124_v31, %v121_v26  ;;  %511 = vmatmul.mubr.msk.f32.gmra.mrb[12].mxu1 %vm181_vm2, %v124_v31 }
  0xe6   :  { %176 = vst.msk [vmem:[%s768_s4 + $0x1c] sm:$0xf] %vm168_vm3, %v459_v29  ;;  %513 = vmatprep.mubr.msk.f32.mxu1 %vm181_vm2, %v494_v24 }
  0xe7   :  { %174 = vst.msk [vmem:[%s768_s4 + $0x14] sm:$0xf] %vm168_vm3, %v457_v32  ;;  %550 = vmatpush3.bf16.xpose.msk.msra.mxu0 %vm669_vm4, %v548_v19 }
  0xe8   :  { %551 = vmatprep.subr.bf16.mxu0 %v592_v11 }
  0xe9   :  { %514 = vmatmul.mubr.msk.f32.gmra.mrb[14].mxu1 %vm181_vm2, %v495_v28 }
  0xef   :  { %554 = vmatpush3.bf16.xpose.msk.msra.mxu0 %vm669_vm4, %v552_v33 }
  0xf0   :  { %555 = vmatprep.subr.bf16.mxu0 %v592_v11 }
  0xf7   :  { %558 = vmatpush3.bf16.xpose.msk.msra.mxu0 %vm669_vm4, %v556_v30 }
  0xfe   :  { %533 = vmatmul.mubr.msk.f32.vlgmr.msra.gmra.mrb[0].mxu0 %vm181_vm2, %v320_v34 }
 0x1b0   :  { %v506_v35 = vpop.f32.mrb[8].mxu1 }
 0x1b1   :  { %313 = vst.msk [vmem:[%s769_s5 + $0x8] sm:$0xff] %vm311_vm5, %v506_v35  ;;  %v272_v36 = vpop.f32.mrb[9].mxu1 }
 0x1b2   :  { %312 = vst.msk [vmem:[%s769_s5] sm:$0xff] %vm311_vm5, %v272_v36 }
 0x1b4   :  { %v509_v37 = vpop.f32.mrb[10].mxu1 }
 0x1b5   :  { %315 = vst.msk [vmem:[%s769_s5 + $0x18] sm:$0xff] %vm311_vm5, %v509_v37  ;;  %v282_v38 = vpop.f32.mrb[11].mxu1 }
 0x1b6   :  { %314 = vst.msk [vmem:[%s769_s5 + $0x10] sm:$0xff] %vm311_vm5, %v282_v38 }
 0x1b8   :  { %v512_v39 = vpop.f32.mrb[12].mxu1 }
 0x1b9   :  { %317 = vst.msk [vmem:[%s769_s5 + $0x28] sm:$0xff] %vm311_vm5, %v512_v39  ;;  %v292_v40 = vpop.f32.mrb[13].mxu1 }
 0x1ba   :  { %316 = vst.msk [vmem:[%s769_s5 + $0x20] sm:$0xff] %vm311_vm5, %v292_v40 }
 0x1bc   :  { %v515_v41 = vpop.f32.mrb[14].mxu1 }
 0x1bd   :  { %319 = vst.msk [vmem:[%s769_s5 + $0x38] sm:$0xff] %vm311_vm5, %v515_v41  ;;  %v302_v42 = vpop.f32.mrb[15].mxu1 }
 0x1be   :  { %318 = vst.msk [vmem:[%s769_s5 + $0x30] sm:$0xff] %vm311_vm5, %v302_v42 }
 0x1d1   :  { %v390_v43 = vpop.f32.mrb[0].mxu0 }
 0x1d2   :  { %395 = vst.msk [vmem:[#allocation2] sm:$0xf] %vm394_vm6, %v390_v43  ;;  %v534_v44 = vpop.f32.mrb[1].mxu0 }
 0x1d3   :  { %579 = shalt.err (!%p576_p4)
}
 0x1d4   :  { %s580_s22 = scalar_lea.hbm %s770_s6, 64 }
 0x1d5   :  { %p581_p5 = scmp.ne.s32.totalorder %s770_s6, %s580_s22  ;;  %p584_p6 = scmp.lt.u32.totalorder %s580_s22, %s770_s6 }
 0x1d7   :  { %p586_p7 = pnand %p584_p6, %p581_p5 }
 0x1d9   :  { %589 = shalt.err (!%p586_p7)
}
 0x1da   :  { %409 = dma.vmem_to_hbm [thread:$0]  %s407_s18, 64, %s770_s6, [#allocation3]  }
 0x1db   :  { %590 = dma.done.wait [#allocation3], 64  }
 0x1dc   :  { %591 = vsyncadd [#allocation3], 4294967232 }
 0x1dd   :  { %417 = vsyncpa [#allocation3], 1 }

</bundles_post_ra>
